<compile_context>
chip_gen: v7x
topology: tpu7x:2x2x1
jax: 0.10.0
libtpu: 0.0.40
codegen_flags: <defaults>
</compile_context>

<pallas_src>
import functools

import jax
import jax.numpy as jnp
import numpy as np
from jax.experimental import pallas as pl
from jax.experimental.pallas import tpu as pltpu


def _round_up(v, m):
    return (v + m - 1) // m * m


def _fc_kernel(x_ref, w_ref, b_ref, o_ref, acc_ref):
    """One (tm, tn) output tile, accumulated over the K grid axis.

    x_ref: (tm, tk) compute-dtype   w_ref: (tk, tn) compute-dtype
    b_ref: (1, tn)  f32             o_ref: (tm, tn) out-dtype
    acc_ref: (tm, tn) f32 VMEM scratch (persists across the k axis).
    """
    k = pl.program_id(2)

    @pl.when(k == 0)
    def _():
        acc_ref[...] = jnp.zeros_like(acc_ref)

    acc_ref[...] += jnp.dot(x_ref[...], w_ref[...],
                            preferred_element_type=jnp.float32)

    @pl.when(k == pl.num_programs(2) - 1)
    def _():
        o_ref[...] = (acc_ref[...] + b_ref[...]).astype(o_ref.dtype)


def prepare_params(weight, bias, *, compute_dtype=jnp.bfloat16,
                   block_n=256, block_k=512):
    """Hoist per-call weight work out of the forward pass (weights are static).

    weight: (units, in_features) PyTorch layout; bias: (units,)
    Returns (w_padded (Kp, Np) compute_dtype, b_padded (1, Np) f32, n_out).
    """
    n_out, k_in = weight.shape
    kp128 = _round_up(k_in, 128)
    np128 = _round_up(n_out, 128)
    tk = min(block_k, kp128)
    tn = min(block_n, np128)
    kp = _round_up(k_in, tk)
    npad = _round_up(n_out, tn)

    w_padded = jnp.zeros((kp, npad), compute_dtype).at[:k_in, :n_out].set(
        weight.T.astype(compute_dtype))
    b_padded = jnp.zeros((1, npad), jnp.float32).at[:, :n_out].set(
        bias.astype(jnp.float32).reshape(1, n_out))
    return w_padded, b_padded, n_out


@functools.partial(
    jax.jit,
    static_argnames=("n_out", "block_m", "block_n", "block_k", "force_pallas"))
def fully_connected(x, w_padded, b_padded, *, n_out,
                    block_m=512, block_n=256, block_k=512,
                    force_pallas=False):
    """PyTorch nn.Linear forward: y = x @ weight.T + bias.

    x:        (..., in_features)
    w_padded: (Kp, Np) compute-dtype (from prepare_params)
    b_padded: (1, Np)  f32           (from prepare_params)
    """
    *lead, k_in = x.shape
    kp, npad = w_padded.shape
    cd = w_padded.dtype
    out_dtype = x.dtype

    x2 = x.reshape(-1, k_in)
    m = x2.shape[0]

    # Tiny-problem fast path: padding + pallas_call overhead dwarfs the compute.
    if not force_pallas and m * k_in * n_out < (1 << 18):
        y = jnp.dot(x2.astype(cd), w_padded,
                    preferred_element_type=jnp.float32) + b_padded
        return y[:, :n_out].astype(out_dtype).reshape(*lead, n_out)

    # Tile sizes: (8,128)-aligned, must divide the padded extents.
    tm = min(block_m, _round_up(m, 8))
    tn = min(block_n, npad)
    if npad % tn:
        tn = npad
    tk = min(block_k, kp)
    if kp % tk:
        tk = kp
    mp = _round_up(m, tm)

    # Pad x rows to the row tile, K to Kp; compute dtype in HBM (bf16 by default).
    xp = jnp.zeros((mp, kp), cd).at[:m, :k_in].set(x2.astype(cd))

    grid = (mp // tm, npad // tn, kp // tk)

    cd_bytes = jnp.dtype(cd).itemsize
    out_bytes = jnp.dtype(out_dtype).itemsize

    # VMEM need: double-buffered input tiles + f32 accumulator + output buffers.
    vmem_need = (2 * (tm * tk + tk * tn) * cd_bytes
                 + 2 * tn * 4
                 + tm * tn * 4
                 + 2 * tm * tn * out_bytes)
    vmem_limit = int(min(48 * 2 ** 20, max(2 * vmem_need, 16 * 2 ** 20)))

    cost = pl.CostEstimate(
        flops=2 * mp * kp * npad,
        transcendentals=0,
        bytes_accessed=(cd_bytes * (mp * kp * (npad // tn)    # x re-streamed per j
                                    + kp * npad * (mp // tm))  # W re-streamed per i
                        + 4 * npad + out_bytes * mp * npad),
    )

    out = pl.pallas_call(
        _fc_kernel,
        out_shape=jax.ShapeDtypeStruct((mp, npad), out_dtype),
        grid=grid,
        in_specs=[
            pl.BlockSpec((tm, tk), lambda i, j, k: (i, k)),   # x row/K tile
            pl.BlockSpec((tk, tn), lambda i, j, k: (k, j)),   # W K/col tile
            pl.BlockSpec((1, tn), lambda i, j, k: (0, j)),    # bias slice
        ],
        out_specs=pl.BlockSpec((tm, tn), lambda i, j, k: (i, j)),
        scratch_shapes=[pltpu.VMEM((tm, tn), jnp.float32)],
        compiler_params=pltpu.CompilerParams(
            dimension_semantics=("parallel", "parallel", "arbitrary"),
            vmem_limit_bytes=vmem_limit,
        ),
        cost_estimate=cost,
    )(xp, w_padded, b_padded)

    return out[:m, :n_out].reshape(*lead, n_out)


def init_params(key, in_features, units):
    """Mirror the module's init: kaiming_normal_(weight, relu) + default Linear bias."""
    kw, kb = jax.random.split(key)
    w = jax.random.normal(kw, (units, in_features), jnp.float32) * jnp.sqrt(
        2.0 / in_features)
    bound = (1.0 / in_features) ** 0.5
    b = jax.random.uniform(kb, (units,), jnp.float32, -bound, bound)
    return w, b


if __name__ == "__main__":
    key = jax.random.PRNGKey(0)
    kx1, kw1, kx2, kw2 = jax.random.split(key, 4)

    # --- Test 1: small shapes consistent with the module (batch=2, seq=8, 32->32)
    batch, seq, in_features, units = 2, 8, 32, 32
    x = jax.random.normal(kx1, (batch, seq, in_features), jnp.float32)
    weight, bias = init_params(kw1, in_features, units)

    w_p, b_p, n_out = prepare_params(weight, bias)          # one-time weight prep
    out = jax.block_until_ready(
        fully_connected(x, w_p, b_p, n_out=n_out, force_pallas=True))
    assert out.shape == (batch, seq, units)

    ref = x @ weight.T + bias
    np.testing.assert_allclose(np.asarray(out), np.asarray(ref),
                               atol=2e-2, rtol=2e-2)

    # --- Test 2: larger FC exercising the K-reduction grid axis and N padding
    m2, k2, n2 = 256, 1024, 384
    x2 = jax.random.normal(kx2, (m2, k2), jnp.float32)
    w2, b2 = init_params(kw2, k2, n2)
    w2_p, b2_p, n2_out = prepare_params(w2, b2)
    out2 = jax.block_until_ready(
        fully_connected(x2, w2_p, b2_p, n_out=n2_out, force_pallas=True))
    assert out2.shape == (m2, n2)

    ref2 = x2 @ w2.T + b2
    np.testing.assert_allclose(np.asarray(out2), np.asarray(ref2),
                               atol=6e-2, rtol=6e-2)

    print("KERNEL_OK")
</pallas_src>

<mosaic_0001>
module attributes {stable_mosaic.version = 11 : i64} {
  func.func @_fc_kernel(%arg0: i32, %arg1: i32, %arg2: i32, %arg3: memref<16x128xbf16, #tpu.memory_space<vmem>>, %arg4: memref<128x128xbf16, #tpu.memory_space<vmem>>, %arg5: memref<1x128xf32, #tpu.memory_space<vmem>>, %arg6: memref<16x128xf32, #tpu.memory_space<vmem>>, %arg7: memref<16x128xf32, #tpu.memory_space<vmem>>) attributes {dimension_semantics = [#tpu.dimension_semantics<parallel>, #tpu.dimension_semantics<parallel>, #tpu.dimension_semantics<arbitrary>], iteration_bounds = array<i64: 1, 1, 1>, scalar_prefetch = 0 : i64, scratch_operands = 1 : i64, tpu.core_type = #tpu.core_type<tc>, window_params = [{transform_indices = @transform_0, window_bounds = array<i64: 16, 128>}, {transform_indices = @transform_1, window_bounds = array<i64: 128, 128>}, {transform_indices = @transform_2, window_bounds = array<i64: 1, 128>}, {transform_indices = @transform_3, window_bounds = array<i64: 16, 128>}]} {
    %c0_i32 = arith.constant 0 : i32
    %0 = arith.cmpi eq, %arg2, %c0_i32 : i32
    %1 = arith.extui %0 : i1 to i32
    %c0_i32_0 = arith.constant 0 : i32
    %2 = arith.cmpi ne, %1, %c0_i32_0 : i32
    scf.if %2 {
      %cst_10 = arith.constant 0.000000e+00 : f32
      %12 = vector.broadcast %cst_10 : f32 to vector<16x128xf32>
      %c0_11 = arith.constant 0 : index
      %c0_12 = arith.constant 0 : index
      %13 = vector.load %arg7[%c0_11, %c0_12] : memref<16x128xf32, #tpu.memory_space<vmem>>, vector<16x128xf32>
      tpu.vector_store %arg7[%c0_11, %c0_12], %12 {strides = array<i32>} : memref<16x128xf32, #tpu.memory_space<vmem>>, vector<16x128xf32>,
    } else {
    }
    %c0 = arith.constant 0 : index
    %c0_1 = arith.constant 0 : index
    %3 = vector.load %arg7[%c0, %c0_1] : memref<16x128xf32, #tpu.memory_space<vmem>>, vector<16x128xf32>
    %c0_2 = arith.constant 0 : index
    %c0_3 = arith.constant 0 : index
    %4 = vector.load %arg3[%c0_2, %c0_3] : memref<16x128xbf16, #tpu.memory_space<vmem>>, vector<16x128xbf16>
    %c0_4 = arith.constant 0 : index
    %c0_5 = arith.constant 0 : index
    %5 = vector.load %arg4[%c0_4, %c0_5] : memref<128x128xbf16, #tpu.memory_space<vmem>>, vector<128x128xbf16>
    %cst = arith.constant dense<0.000000e+00> : vector<16x128xf32>
    %6 = tpu.matmul %4, %5, %cst {dimension_numbers = #tpu.dot_dimension_numbers<[1], [0], [0], [1], [0, 0, 1, 1], [], []>} : vector<16x128xbf16>, vector<128x128xbf16>, vector<16x128xf32> -> vector<16x128xf32>
    %7 = arith.addf %3, %6 : vector<16x128xf32>
    %c0_6 = arith.constant 0 : index
    %c0_7 = arith.constant 0 : index
    %8 = vector.load %arg7[%c0_6, %c0_7] : memref<16x128xf32, #tpu.memory_space<vmem>>, vector<16x128xf32>
    tpu.vector_store %arg7[%c0_6, %c0_7], %7 {strides = array<i32>} : memref<16x128xf32, #tpu.memory_space<vmem>>, vector<16x128xf32>,
    %c0_i32_8 = arith.constant 0 : i32
    %9 = arith.cmpi eq, %arg2, %c0_i32_8 : i32
    %10 = arith.extui %9 : i1 to i32
    %c0_i32_9 = arith.constant 0 : i32
    %11 = arith.cmpi ne, %10, %c0_i32_9 : i32
    scf.if %11 {
      %c0_10 = arith.constant 0 : index
      %c0_11 = arith.constant 0 : index
      %12 = vector.load %arg7[%c0_10, %c0_11] : memref<16x128xf32, #tpu.memory_space<vmem>>, vector<16x128xf32>
      %c0_12 = arith.constant 0 : index
      %c0_13 = arith.constant 0 : index
      %13 = vector.load %arg5[%c0_12, %c0_13] : memref<1x128xf32, #tpu.memory_space<vmem>>, vector<1x128xf32>
      %14 = vector.broadcast %13 : vector<1x128xf32> to vector<16x128xf32>
      %15 = arith.addf %12, %14 : vector<16x128xf32>
      %c0_14 = arith.constant 0 : index
      %c0_15 = arith.constant 0 : index
      %16 = vector.load %arg6[%c0_14, %c0_15] : memref<16x128xf32, #tpu.memory_space<vmem>>, vector<16x128xf32>
      tpu.vector_store %arg6[%c0_14, %c0_15], %15 {strides = array<i32>} : memref<16x128xf32, #tpu.memory_space<vmem>>, vector<16x128xf32>,
    } else {
    }
    return
  }
  func.func @transform_0(%arg0: i32, %arg1: i32, %arg2: i32) -> (i32, i32) {
    %c0_i32 = arith.constant 0 : i32
    return %arg0, %arg2 : i32, i32
  }
  func.func @transform_1(%arg0: i32, %arg1: i32, %arg2: i32) -> (i32, i32) {
    %c0_i32 = arith.constant 0 : i32
    return %arg2, %arg1 : i32, i32
  }
  func.func @transform_2(%arg0: i32, %arg1: i32, %arg2: i32) -> (i32, i32) {
    %c0_i32 = arith.constant 0 : i32
    %c0_i32_0 = arith.constant 0 : i32
    return %c0_i32, %arg1 : i32, i32
  }
  func.func @transform_3(%arg0: i32, %arg1: i32, %arg2: i32) -> (i32, i32) {
    %c0_i32 = arith.constant 0 : i32
    return %arg0, %arg1 : i32, i32
  }
}

</mosaic_0001>

<bundles_post_ra>
// kernel: fully_connected.1
= control target key start
LH: loop header
LB: loop body
LE: loop exit
PB: predicated region body
PF: predicated region fallthrough
CT: control target
= control target key end

     0   :  { %8 = vsyncpa [#allocation4], 0  ;;  %s252_s12 = smov [#allocation3]   ;;  %s301_s0 = inlined_call_operand.vmem [shape: bf16[16,128], index: 0, kind: input, shape index: {}]   ;;  %s302_s1 = inlined_call_operand.hbm [shape: bf16[128,128], index: 1, kind: input, shape index: {}]   ;;  %s303_s2 = inlined_call_operand.vmem [shape: f32[1,128], index: 2, kind: input, shape index: {}]   ;;  %s304_s3 = inlined_call_operand.vmem [shape: f32[16,128], index: 3, kind: output, shape index: {}]  }
   0x1   :  { %s16_s13 = sshll.u32 %s252_s12, 4  ;;  %s228_s16 = scalar_lea.hbm %s302_s1, 1024  ;;  %s17_s13 = int_to_ptr.vmem [resolvable:$true] %s16_s13 }
   0x2   :  { %p229_p0 = scmp.ne.s32.totalorder %s302_s1, %s228_s16  ;;  %p232_p1 = scmp.lt.u32.totalorder %s228_s16, %s302_s1 }
   0x4   :  { %p234_p2 = pnand %p232_p1, %p229_p0 }
   0x6   :  { %237 = shalt.err (!%p234_p2)
}
   0x7   :  { %s238_s21 = scalar_lea.vmem %s17_s13, 1024  ;;  %p243_p4 = scmp.lt.s32.totalorder %s17_s13, %s17_s13 }
   0x8   :  { %p239_p3 = scmp.ne.s32.totalorder %s17_s13, %s238_s21  ;;  %p244_p5 = scmp.lt.s32.totalorder %s238_s21, %s238_s21 }
   0xa   :  { %p245_p6 = por %p244_p5, %p243_p4 }
   0xc   :  { %p246_p7 = pnand %p245_p6, %p239_p3 }
   0xe   :  { %249 = shalt.err (!%p246_p7)
}
   0xf   :  { %s253_s22 = smov 64   ;;  %s254_s23 = smov 4  }
  0x10   :  { %22 = dma.hbm_to_vmem [thread:$0]  %s302_s1, 1024, %s17_s13, [#allocation4], %s253_s22, %s253_s22, %s254_s23  }
  0x11   :  { %250 = dma.done.wait [#allocation4], 1024  }
  0x12   :  { %251 = vsyncadd [#allocation4], 4294966272  ;;  %v255_v0 = vmov 0.0   ;;  %vm256_vm0 = vmmov 0   ;;  %v219_v1 = vld [vmem:[#allocation3] sm:$0xff]   ;;  %v220_v2 = vld [vmem:[#allocation3 + $0x8] sm:$0xff]  }
  0x13   :  { %194 = vmatprep.subr.bf16.mxu0 %v255_v0  ;;  %210 = vmatprep.mubr.msk.bf16.mxu0 %vm256_vm0, %v255_v0  ;;  %v221_v3 = vld [vmem:[#allocation3 + $0x10] sm:$0xff]   ;;  %v222_v4 = vld [vmem:[#allocation3 + $0x18] sm:$0xff]   ;;  %v223_v5 = vld [vmem:[#allocation3 + $0x20] sm:$0xff]  }
  0x14   :  { %195 = vmatpush3.bf16.msra.mxu0 %v219_v1  ;;  %v224_v6 = vld [vmem:[#allocation3 + $0x28] sm:$0xff]   ;;  %v225_v7 = vld [vmem:[#allocation3 + $0x30] sm:$0xff]   ;;  %v226_v8 = vld [vmem:[#allocation3 + $0x38] sm:$0xff]  }
  0x15   :  { %196 = vmatprep.subr.bf16.mxu0 %v255_v0  ;;  %v227_v9 = vld [vmem:[%s301_s0] sm:$0xff]  }
  0x16   :  { %v184_v10 = vld [vmem:[%s303_s2] ss:$0 sm:$0xff] }
  0x18   :  { %197 = vmatpush3.bf16.msra.mxu0 %v220_v2 }
  0x19   :  { %198 = vmatprep.subr.bf16.mxu0 %v255_v0 }
  0x1c   :  { %199 = vmatpush3.bf16.msra.mxu0 %v221_v3 }
  0x1d   :  { %200 = vmatprep.subr.bf16.mxu0 %v255_v0 }
  0x20   :  { %201 = vmatpush3.bf16.msra.mxu0 %v222_v4 }
  0x21   :  { %202 = vmatprep.subr.bf16.mxu0 %v255_v0 }
  0x24   :  { %203 = vmatpush3.bf16.msra.mxu0 %v223_v5 }
  0x25   :  { %204 = vmatprep.subr.bf16.mxu0 %v255_v0 }
  0x28   :  { %205 = vmatpush3.bf16.msra.mxu0 %v224_v6 }
  0x29   :  { %206 = vmatprep.subr.bf16.mxu0 %v255_v0 }
  0x2c   :  { %207 = vmatpush3.bf16.msra.mxu0 %v225_v7 }
  0x2d   :  { %208 = vmatprep.subr.bf16.mxu0 %v255_v0 }
  0x30   :  { %209 = vmatpush3.bf16.msra.mxu0 %v226_v8 }
  0x33   :  { %211 = vmatmul.mubr.bf16.vlgmr.msra.gmra.mrb[0].mxu0 %v227_v9 }
 0x106   :  { %v143_v11 = vpop.f32.mrb[0].mxu0 }
 0x107   :  { %v166_v12 = vadd.f32 %v184_v10, %v143_v11  ;;  %v212_v13 = vpop.f32.mrb[1].mxu0 }
 0x108   :  { %v146_v14 = vpop.f32.mrb[2].mxu0 }
 0x109   :  { %168 = vst [vmem:[%s304_s3] sm:$0xff] %v166_v12  ;;  %v167_v15 = vadd.f32 %v184_v10, %v146_v14  ;;  %v213_v16 = vpop.f32.mrb[3].mxu0 }
 0x10b   :  { %169 = vst [vmem:[%s304_s3 + $0x8] sm:$0xff] %v167_v15 }
 0x10c   :  { %174 = vsyncpa [#allocation4], 1 }

</bundles_post_ra>
